<compile_context>
chip_gen: v7x
topology: tpu7x:2x2x1
jax: 0.10.0
libtpu: 0.0.40
codegen_flags: <defaults>
</compile_context>

<pallas_src>
import functools

import jax
import jax.numpy as jnp
from jax.experimental import pallas as pl
from jax.experimental.pallas import tpu as pltpu


def _round_up(x: int, m: int) -> int:
    return ((x + m - 1) // m) * m


def _mlp_kernel(x_ref, w1_ref, w2_ref, w3_ref, b3_ref, o_ref):
    # Cast the f32 x tile to the MXU compute dtype in VMEM (no extra HBM pass).
    x = x_ref[...].astype(w1_ref.dtype)
    # Hidden layer 1: Linear(no bias) + ReLU. bf16 inputs, f32 accumulation.
    h = jnp.dot(x, w1_ref[...], preferred_element_type=jnp.float32)
    h = jnp.maximum(h, 0.0)
    # Hidden layer 2: Linear(no bias) + ReLU.
    h = jnp.dot(h.astype(w2_ref.dtype), w2_ref[...],
                preferred_element_type=jnp.float32)
    h = jnp.maximum(h, 0.0)
    # Output layer: Linear with bias (no activation, no norm). Bias stays f32.
    out = jnp.dot(h.astype(w3_ref.dtype), w3_ref[...],
                  preferred_element_type=jnp.float32)
    out = out + b3_ref[...]
    # Store only the real output columns: the accumulator is lane-padded (128)
    # in VMEM, but HBM writeback is unpadded (out_dim columns).
    o_ref[...] = out[:, : o_ref.shape[-1]].astype(o_ref.dtype)


@functools.partial(jax.jit, static_argnames=("tb", "compute_dtype"))
def generic_mlp(x, w1, w2, w3, b3, *, tb=2048, compute_dtype=jnp.bfloat16):
    """x: (B, input_dim) float32. Returns (B, output_dim) float32.

    tb: target batch tile (rows per grid step), default 2048.
    compute_dtype: MXU input dtype (bf16 recommended); accumulation is f32.
    """
    B, in_dim = x.shape
    h1 = w1.shape[1]
    h2 = w2.shape[1]
    out_dim = w3.shape[1]

    # --- Lane-dense W3/b3 for the MXU (VMEM only; HBM output stays unpadded). ---
    out_pad = _round_up(out_dim, 128)
    if out_pad != out_dim:
        w3p = jnp.zeros((h2, out_pad), w3.dtype).at[:, :out_dim].set(w3)
        b3p = jnp.zeros((1, out_pad), b3.dtype).at[:, :out_dim].set(b3)
    else:
        w3p, b3p = w3, b3

    # --- Batch tiling: big tiles amortize per-step overhead; no jnp.pad of x. ---
    b16 = _round_up(B, 16)
    tb_eff = min(_round_up(tb, 16), b16)
    if tb_eff >= b16 and b16 >= 256:
        # Whole batch would be a single grid step: split in two so v7x's two
        # TensorCores both get work ("parallel" grid axis).
        tb_eff = _round_up(pl.cdiv(B, 2), 16)
    elif tb_eff >= B:
        # Tiny batch: one full-extent block (always a legal block shape).
        tb_eff = B
    grid = (pl.cdiv(B, tb_eff),)

    # Weight casts/pads are tiny and done once; x stays f32 (cast in-kernel).
    w1c = w1.astype(compute_dtype)
    w2c = w2.astype(compute_dtype)
    w3c = w3p.astype(compute_dtype)
    b3f = b3p.astype(jnp.float32)

    wbytes = jnp.dtype(compute_dtype).itemsize
    flops = 2 * B * (in_dim * h1 + h1 * h2 + h2 * out_pad)
    bytes_accessed = (
        B * in_dim * 4                                        # x (f32 in)
        + (in_dim * h1 + h1 * h2 + h2 * out_pad) * wbytes     # weights (bf16)
        + out_pad * 4                                         # bias (f32)
        + B * out_dim * 4                                     # output (f32, unpadded)
    )
    cost = pl.CostEstimate(flops=flops, transcendentals=0,
                           bytes_accessed=bytes_accessed)

    out = pl.pallas_call(
        _mlp_kernel,
        out_shape=jax.ShapeDtypeStruct((B, out_dim), jnp.float32),
        grid_spec=pltpu.PrefetchScalarGridSpec(
            num_scalar_prefetch=0,
            grid=grid,
            in_specs=[
                pl.BlockSpec((tb_eff, in_dim), lambda i: (i, 0)),   # x tile (f32)
                # Constant block index => no per-step re-DMA; weights resident.
                pl.BlockSpec(w1c.shape, lambda i: (0, 0)),          # W1 (full)
                pl.BlockSpec(w2c.shape, lambda i: (0, 0)),          # W2 (full)
                pl.BlockSpec(w3c.shape, lambda i: (0, 0)),          # W3 (full, lane-padded)
                pl.BlockSpec(b3f.shape, lambda i: (0, 0)),          # b3 (full, lane-padded)
            ],
            out_specs=pl.BlockSpec((tb_eff, out_dim), lambda i: (i, 0)),
        ),
        compiler_params=pltpu.CompilerParams(
            dimension_semantics=("parallel",),   # sharded across TCs on v7x
            vmem_limit_bytes=32 << 20,           # raise v5e's 16 MiB default
        ),
        cost_estimate=cost,
    )(x, w1c, w2c, w3c, b3f)

    return out


def _init_params(key, input_dim, hidden_dims, output_dim):
    """Deterministic parameter init (Kaiming-uniform-like, matching Linear shapes)."""
    dims = [input_dim] + list(hidden_dims) + [output_dim]
    keys = jax.random.split(key, len(dims))
    weights = []
    for i in range(len(dims) - 1):
        fan_in, fan_out = dims[i], dims[i + 1]
        bound = 1.0 / jnp.sqrt(fan_in)
        # stored as (in, out) == transpose of torch's (out, in)
        w = jax.random.uniform(
            keys[i], (fan_in, fan_out), minval=-bound, maxval=bound,
            dtype=jnp.float32)
        weights.append(w)
    # output bias (output_use_bias=True); hidden layers have no bias.
    b_out = jax.random.uniform(
        keys[-1], (1, output_dim),
        minval=-1.0 / jnp.sqrt(dims[-2]), maxval=1.0 / jnp.sqrt(dims[-2]),
        dtype=jnp.float32)
    return weights, b_out


def _reference(x, w1, w2, w3, b3, compute_dtype=jnp.float32):
    """Pure-JAX reference; optionally mirrors the kernel's bf16 input casts."""
    c = lambda a: a.astype(compute_dtype).astype(jnp.float32)
    h = jnp.maximum(jnp.dot(c(x), c(w1)), 0.0)
    h = jnp.maximum(jnp.dot(c(h), c(w2)), 0.0)
    return jnp.dot(c(h), c(w3)) + b3


if __name__ == "__main__":
    input_dim, hidden_dims, output_dim = 32, [64, 64], 16

    key = jax.random.PRNGKey(0)
    kx, kp = jax.random.split(key)
    (w1, w2, w3), b3 = _init_params(kp, input_dim, hidden_dims, output_dim)

    # Case 1: small batch -> single full-extent block, grid=(1,).
    batch = 16
    x = jax.random.normal(kx, (batch, input_dim), dtype=jnp.float32)
    out = jax.block_until_ready(generic_mlp(x, w1, w2, w3, b3))
    assert out.shape == (batch, output_dim), out.shape
    ref_f32 = _reference(x, w1, w2, w3, b3)
    ref_bf16 = _reference(x, w1, w2, w3, b3, compute_dtype=jnp.bfloat16)
    assert jnp.allclose(out, ref_bf16, atol=2e-3, rtol=2e-3), \
        "mismatch vs bf16-mirrored reference"
    assert jnp.allclose(out, ref_f32, atol=5e-2, rtol=5e-2), \
        "mismatch vs f32 reference"

    # Case 2: ragged batch (B=500) -> tile split for the 2-step parallel grid,
    # masked edge block (no jnp.pad), unpadded output writeback.
    batch2 = 500
    x2 = jax.random.normal(jax.random.PRNGKey(1), (batch2, input_dim),
                           dtype=jnp.float32)
    out2 = jax.block_until_ready(generic_mlp(x2, w1, w2, w3, b3))
    assert out2.shape == (batch2, output_dim), out2.shape
    ref2_bf16 = _reference(x2, w1, w2, w3, b3, compute_dtype=jnp.bfloat16)
    ref2_f32 = _reference(x2, w1, w2, w3, b3)
    assert jnp.allclose(out2, ref2_bf16, atol=2e-3, rtol=2e-3), \
        "mismatch vs bf16-mirrored reference (ragged)"
    assert jnp.allclose(out2, ref2_f32, atol=5e-2, rtol=5e-2), \
        "mismatch vs f32 reference (ragged)"

    print("KERNEL_OK")
</pallas_src>

<mosaic_0001>
module attributes {stable_mosaic.version = 11 : i64} {
  func.func @_mlp_kernel(%arg0: i32, %arg1: memref<16x32xf32, #tpu.memory_space<vmem>>, %arg2: memref<32x64xbf16, #tpu.memory_space<vmem>>, %arg3: memref<64x64xbf16, #tpu.memory_space<vmem>>, %arg4: memref<64x128xbf16, #tpu.memory_space<vmem>>, %arg5: memref<1x128xf32, #tpu.memory_space<vmem>>, %arg6: memref<16x16xf32, #tpu.memory_space<vmem>>) attributes {dimension_semantics = [#tpu.dimension_semantics<parallel>], iteration_bounds = array<i64: 1>, scalar_prefetch = 0 : i64, scratch_operands = 0 : i64, tpu.core_type = #tpu.core_type<tc>, window_params = [{transform_indices = @transform_0, window_bounds = array<i64: 16, 32>}, {pipeline_mode = #tpu.pipeline_mode<synchronous>, transform_indices = @transform_1, window_bounds = array<i64: 32, 64>}, {pipeline_mode = #tpu.pipeline_mode<synchronous>, transform_indices = @transform_2, window_bounds = array<i64: 64, 64>}, {pipeline_mode = #tpu.pipeline_mode<synchronous>, transform_indices = @transform_3, window_bounds = array<i64: 64, 128>}, {pipeline_mode = #tpu.pipeline_mode<synchronous>, transform_indices = @transform_4, window_bounds = array<i64: 1, 128>}, {transform_indices = @transform_5, window_bounds = array<i64: 16, 16>}]} {
    %c0 = arith.constant 0 : index
    %c0_0 = arith.constant 0 : index
    %0 = vector.load %arg1[%c0, %c0_0] : memref<16x32xf32, #tpu.memory_space<vmem>>, vector<16x32xf32>
    %1 = arith.truncf %0 : vector<16x32xf32> to vector<16x32xbf16>
    %c0_1 = arith.constant 0 : index
    %c0_2 = arith.constant 0 : index
    %2 = vector.load %arg2[%c0_1, %c0_2] : memref<32x64xbf16, #tpu.memory_space<vmem>>, vector<32x64xbf16>
    %cst = arith.constant dense<0.000000e+00> : vector<16x64xf32>
    %3 = tpu.matmul %1, %2, %cst {dimension_numbers = #tpu.dot_dimension_numbers<[1], [0], [0], [1], [0, 0, 1, 1], [], []>} : vector<16x32xbf16>, vector<32x64xbf16>, vector<16x64xf32> -> vector<16x64xf32>
    %cst_3 = arith.constant 0.000000e+00 : f32
    %4 = vector.broadcast %cst_3 : f32 to vector<16x64xf32>
    %5 = arith.maximumf %3, %4 : vector<16x64xf32>
    %6 = arith.truncf %5 : vector<16x64xf32> to vector<16x64xbf16>
    %c0_4 = arith.constant 0 : index
    %c0_5 = arith.constant 0 : index
    %7 = vector.load %arg3[%c0_4, %c0_5] : memref<64x64xbf16, #tpu.memory_space<vmem>>, vector<64x64xbf16>
    %cst_6 = arith.constant dense<0.000000e+00> : vector<16x64xf32>
    %8 = tpu.matmul %6, %7, %cst_6 {dimension_numbers = #tpu.dot_dimension_numbers<[1], [0], [0], [1], [0, 0, 1, 1], [], []>} : vector<16x64xbf16>, vector<64x64xbf16>, vector<16x64xf32> -> vector<16x64xf32>
    %cst_7 = arith.constant 0.000000e+00 : f32
    %9 = vector.broadcast %cst_7 : f32 to vector<16x64xf32>
    %10 = arith.maximumf %8, %9 : vector<16x64xf32>
    %11 = arith.truncf %10 : vector<16x64xf32> to vector<16x64xbf16>
    %c0_8 = arith.constant 0 : index
    %c0_9 = arith.constant 0 : index
    %12 = vector.load %arg4[%c0_8, %c0_9] : memref<64x128xbf16, #tpu.memory_space<vmem>>, vector<64x128xbf16>
    %cst_10 = arith.constant dense<0.000000e+00> : vector<16x128xf32>
    %13 = tpu.matmul %11, %12, %cst_10 {dimension_numbers = #tpu.dot_dimension_numbers<[1], [0], [0], [1], [0, 0, 1, 1], [], []>} : vector<16x64xbf16>, vector<64x128xbf16>, vector<16x128xf32> -> vector<16x128xf32>
    %c0_11 = arith.constant 0 : index
    %c0_12 = arith.constant 0 : index
    %14 = vector.load %arg5[%c0_11, %c0_12] : memref<1x128xf32, #tpu.memory_space<vmem>>, vector<1x128xf32>
    %15 = vector.broadcast %14 : vector<1x128xf32> to vector<16x128xf32>
    %16 = arith.addf %13, %15 : vector<16x128xf32>
    %17 = vector.extract_strided_slice %16 {offsets = [0, 0], sizes = [16, 16], strides = [1, 1]} : vector<16x128xf32> to vector<16x16xf32>
    %c0_13 = arith.constant 0 : index
    %c0_14 = arith.constant 0 : index
    %18 = vector.load %arg6[%c0_13, %c0_14] : memref<16x16xf32, #tpu.memory_space<vmem>>, vector<16x16xf32>
    tpu.vector_store %arg6[%c0_13, %c0_14], %17 {strides = array<i32>} : memref<16x16xf32, #tpu.memory_space<vmem>>, vector<16x16xf32>,
    return
  }
  func.func @transform_0(%arg0: i32) -> (i32, i32) {
    %c0_i32 = arith.constant 0 : i32
    %c0_i32_0 = arith.constant 0 : i32
    return %arg0, %c0_i32 : i32, i32
  }
  func.func @transform_1(%arg0: i32) -> (i32, i32) {
    %c0_i32 = arith.constant 0 : i32
    %c0_i32_0 = arith.constant 0 : i32
    %c0_i32_1 = arith.constant 0 : i32
    return %c0_i32, %c0_i32_0 : i32, i32
  }
  func.func @transform_2(%arg0: i32) -> (i32, i32) {
    %c0_i32 = arith.constant 0 : i32
    %c0_i32_0 = arith.constant 0 : i32
    %c0_i32_1 = arith.constant 0 : i32
    return %c0_i32, %c0_i32_0 : i32, i32
  }
  func.func @transform_3(%arg0: i32) -> (i32, i32) {
    %c0_i32 = arith.constant 0 : i32
    %c0_i32_0 = arith.constant 0 : i32
    %c0_i32_1 = arith.constant 0 : i32
    return %c0_i32, %c0_i32_0 : i32, i32
  }
  func.func @transform_4(%arg0: i32) -> (i32, i32) {
    %c0_i32 = arith.constant 0 : i32
    %c0_i32_0 = arith.constant 0 : i32
    %c0_i32_1 = arith.constant 0 : i32
    return %c0_i32, %c0_i32_0 : i32, i32
  }
  func.func @transform_5(%arg0: i32) -> (i32, i32) {
    %c0_i32 = arith.constant 0 : i32
    %c0_i32_0 = arith.constant 0 : i32
    return %arg0, %c0_i32 : i32, i32
  }
}

</mosaic_0001>

<bundles_post_ra>
// kernel: generic_mlp.1
= control target key start
LH: loop header
LB: loop body
LE: loop exit
PB: predicated region body
PF: predicated region fallthrough
CT: control target
= control target key end

     0   :  { %v369_v1 = vmov 0.0   ;;  %vm370_vm0 = vmmov 0   ;;  %vm41_vm1 = vcmask 261120   ;;  %s458_s0 = inlined_call_operand.vmem [shape: f32[16,32], index: 0, kind: input, shape index: {}]   ;;  %s459_s1 = inlined_call_operand.vmem [shape: bf16[32,64], index: 1, kind: input, shape index: {}]   ;;  %s460_s2 = inlined_call_operand.vmem [shape: bf16[64,64], index: 2, kind: input, shape index: {}]   ;;  %s461_s3 = inlined_call_operand.vmem [shape: bf16[64,128], index: 3, kind: input, shape index: {}]   ;;  %s462_s4 = inlined_call_operand.vmem [shape: f32[1,128], index: 4, kind: input, shape index: {}]   ;;  %s463_s5 = inlined_call_operand.hbm [shape: f32[16,16], index: 5, kind: output, shape index: {}]  }
   0x1   :  { %v335_v0 = vld [vmem:[%s459_s1] sm:$0xff]   ;;  %298 = vmatprep.subr.bf16.mxu0 %v369_v1  ;;  %v336_v2 = vld [vmem:[%s459_s1 + $0x8] sm:$0xff]   ;;  %306 = vmatprep.subr.bf16.mxu1 %v369_v1 }
   0x2   :  { %299 = vmatpush3.bf16.msra.mxu0 %v335_v0  ;;  %302 = vmatprep.mubr.msk.bf16.mxu0 %vm370_vm0, %v369_v1  ;;  %v22_v3 = vld [vmem:[%s458_s0] sm:$0xff]  ;;  %v23_v4 = vld [vmem:[%s458_s0 + $0x8] sm:$0xff] }
   0x3   :  { %300 = vmatprep.subr.bf16.mxu0 %v369_v1  ;;  %v337_v5 = vld [vmem:[%s460_s2] sm:$0xff]   ;;  %314 = vmatprep.mubr.msk.bf16.mxu1 %vm370_vm0, %v369_v1  ;;  %v338_v6 = vld [vmem:[%s460_s2 + $0x8] sm:$0xff]   ;;  %v24_v7 = vpack.c.bf16 %v23_v4, %v22_v3 }
   0x4   :  { %307 = vmatpush3.bf16.msra.mxu1 %v337_v5 }
   0x5   :  { %308 = vmatprep.subr.bf16.mxu1 %v369_v1 }
   0x6   :  { %301 = vmatpush3.bf16.msra.mxu0 %v336_v2 }
   0x7   :  { %318 = vmatprep.subr.bf16.mxu0 %v369_v1 }
   0x8   :  { %10 = vsyncpa [#allocation3], 0  ;;  %309 = vmatpush3.bf16.msra.mxu1 %v338_v6  ;;  %v339_v8 = vld [vmem:[%s460_s2 + $0x10] sm:$0xff]   ;;  %v340_v9 = vld [vmem:[%s460_s2 + $0x18] sm:$0xff]   ;;  %vm121_vm2 = vcmask 523264   ;;  %s371_s16 = smov [#allocation2]  }
   0x9   :  { %303 = vmatmul.mubr.msk.bf16.vlgmr.msra.gmra.mrb[0].mxu0 %vm41_vm1, %v24_v7  ;;  %310 = vmatprep.subr.bf16.mxu1 %v369_v1  ;;  %v341_v10 = vld [vmem:[%s461_s3] sm:$0xff]   ;;  %v342_v11 = vld [vmem:[%s461_s3 + $0x8] sm:$0xff]   ;;  %v343_v19 = vld [vmem:[%s461_s3 + $0x10] sm:$0xff]   ;;  %s260_s17 = sshll.u32 %s371_s16, 4  ;;  %vm252_vm3 = vcmask 130048   ;;  %s261_s17 = int_to_ptr.vmem [resolvable:$true] %s260_s17 }
   0xa   :  { %326 = vmatprep.mubr.msk.bf16.mxu0 %vm370_vm0, %v369_v1  ;;  %319 = vmatpush3.bf16.msra.mxu0 %v341_v10  ;;  %v344_v20 = vld [vmem:[%s461_s3 + $0x18] sm:$0xff]   ;;  %v279_v28 = vld [vmem:[%s462_s4] ss:$0 sm:$0xff]  ;;  %s345_s3 = scalar_lea.vmem %s261_s17, 256  ;;  %p350_p1 = scmp.lt.s32.totalorder %s261_s17, %s261_s17 }
   0xb   :  { %320 = vmatprep.subr.bf16.mxu0 %v369_v1  ;;  %p346_p0 = scmp.ne.s32.totalorder %s261_s17, %s345_s3  ;;  %p351_p2 = scmp.lt.s32.totalorder %s345_s3, %s345_s3 }
   0xc   :  { %311 = vmatpush3.bf16.msra.mxu1 %v339_v8 }
   0xd   :  { %312 = vmatprep.subr.bf16.mxu1 %v369_v1  ;;  %p352_p3 = por %p351_p2, %p350_p1 }
   0xe   :  { %321 = vmatpush3.bf16.msra.mxu0 %v342_v11 }
   0xf   :  { %322 = vmatprep.subr.bf16.mxu0 %v369_v1  ;;  %p353_p4 = pnand %p352_p3, %p346_p0 }
  0x10   :  { %313 = vmatpush3.bf16.msra.mxu1 %v340_v9 }
  0x12   :  { %323 = vmatpush3.bf16.msra.mxu0 %v343_v19 }
  0x13   :  { %324 = vmatprep.subr.bf16.mxu0 %v369_v1 }
  0x16   :  { %325 = vmatpush3.bf16.msra.mxu0 %v344_v20 }
  0xdc   :  { %v79_v12 = vpop.f32.mrb[0].mxu0 }
  0xdd   :  { %v304_v13 = vpop.f32.mrb[1].mxu0  ;;  %v86_v15 = vmax.f32 %v79_v12, 0.0 }
  0xde   :  { %v82_v14 = vpop.f32.mrb[2].mxu0 }
  0xdf   :  { %v87_v16 = vmax.f32 %v82_v14, 0.0  ;;  %v305_v17 = vpop.f32.mrb[3].mxu0 }
  0xe1   :  { %v88_v18 = vpack.c.bf16 %v87_v16, %v86_v15 }
  0xe3   :  { %315 = vmatmul.mubr.msk.bf16.vlgmr.msra.gmra.mrb[0].mxu1 %vm121_vm2, %v88_v18 }
 0x1b6   :  { %v159_v21 = vpop.f32.mrb[0].mxu1 }
 0x1b7   :  { %v316_v22 = vpop.f32.mrb[1].mxu1  ;;  %v166_v24 = vmax.f32 %v159_v21, 0.0 }
 0x1b8   :  { %v162_v23 = vpop.f32.mrb[2].mxu1 }
 0x1b9   :  { %v167_v25 = vmax.f32 %v162_v23, 0.0  ;;  %v317_v26 = vpop.f32.mrb[3].mxu1 }
 0x1bb   :  { %v168_v27 = vpack.c.bf16 %v167_v25, %v166_v24 }
 0x1bd   :  { %327 = vmatmul.mubr.msk.bf16.vlgmr.msra.gmra.mrb[4].mxu0 %vm121_vm2, %v168_v27 }
 0x290   :  { %v245_v29 = vpop.f32.mrb[4].mxu0 }
 0x291   :  { %v246_v30 = vadd.f32 %v279_v28, %v245_v29  ;;  %v328_v31 = vpop.f32.mrb[5].mxu0 }
 0x292   :  { %v248_v32 = vpop.f32.mrb[6].mxu0 }
 0x293   :  { %253 = vst.msk [vmem:[#allocation2] sm:$0xff] %vm252_vm3, %v246_v30  ;;  %v249_v33 = vadd.f32 %v279_v28, %v248_v32  ;;  %v329_v34 = vpop.f32.mrb[7].mxu0 }
 0x295   :  { %254 = vst.msk [vmem:[#allocation2 + $0x8] sm:$0xff] %vm252_vm3, %v249_v33 }
 0x296   :  { %356 = shalt.err (!%p353_p4)
}
 0x297   :  { %s357_s19 = scalar_lea.hbm %s463_s5, 256 }
 0x298   :  { %p358_p5 = scmp.ne.s32.totalorder %s463_s5, %s357_s19  ;;  %p361_p6 = scmp.lt.u32.totalorder %s357_s19, %s463_s5 }
 0x29a   :  { %p363_p7 = pnand %p361_p6, %p358_p5 }
 0x29c   :  { %366 = shalt.err (!%p363_p7)
}
 0x29d   :  { %s372_s24 = smov 128   ;;  %s373_s25 = smov 8  }
 0x29e   :  { %266 = dma.vmem_to_hbm [thread:$0]  %s261_s17, 256, %s463_s5, [#allocation3], %s372_s24, %s372_s24, %s373_s25  }
 0x29f   :  { %367 = dma.done.wait [#allocation3], 256  }
 0x2a0   :  { %368 = vsyncadd [#allocation3], 4294967040 }
 0x2a1   :  { %270 = vsyncpa [#allocation3], 1 }

</bundles_post_ra>
